<compile_context>
chip_gen: v5e
topology: v5e:2x2
jax: 0.10.0
libtpu: 0.0.40
codegen_flags: <defaults>
</compile_context>

<pallas_src>
import functools
from typing import NamedTuple

import jax
import jax.numpy as jnp
from jax.experimental import pallas as pl
from jax.experimental.pallas import tpu as pltpu

_LANE = 128


def _round_up(x, m):
    return (x + m - 1) // m * m


def _pad2d(a, rows, cols):
    r, c = a.shape
    return jnp.pad(a, ((0, rows - r), (0, cols - c)))


def _vmem_capacity_bytes():
    """Physical VMEM of the attached generation; conservative 64 MiB fallback (fits v7x)."""
    try:
        info = pltpu.get_tpu_info()
        cap = getattr(info, "vmem_capacity_bytes", None)
        if cap:
            return int(cap)
    except Exception:
        pass
    return 64 << 20


def _vmem_bytes(tm, n_pad, din_p, hid_p, dout_p, a_resident):
    """Conservative footprint: 2x (double-buffer) for every pipelined operand."""
    bf, f32 = 2, 4
    a = (2 * n_pad * n_pad * bf) if a_resident else (2 * tm * n_pad * bf)
    x = 2 * n_pad * din_p * bf                                   # resident node features
    w = 2 * 2 * (din_p * hid_p + hid_p * dout_p) * bf            # W1_l, W1_r, W2_l, W2_r
    b = 2 * 8 * (hid_p + dout_p) * f32                           # biases (sublane-padded)
    out = 2 * tm * dout_p * f32                                  # output tiles
    h = n_pad * hid_p * bf                                       # VMEM-resident hidden acts
    return a + x + w + b + out + h


class Plan(NamedTuple):
    n: int
    d_in: int
    hid: int
    d_out: int
    n_p: int
    din_p: int
    hid_p: int
    dout_p: int
    tm: int
    a_resident: bool
    vmem_limit: int


def build_plan(n, d_in, hid, d_out):
    """Static tiling/residency plan derived from the actual TPU generation's VMEM."""
    cap = _vmem_capacity_bytes()
    budget = int(cap * 0.80)

    din_p = _round_up(d_in, _LANE)
    hid_p = _round_up(hid, _LANE)
    dout_p = _round_up(d_out, _LANE)
    n_lane = _round_up(n, _LANE)

    # Residency decision at the smallest legal tile (gives A its best chance to fit).
    a_resident = _vmem_bytes(128, n_lane, din_p, hid_p, dout_p, True) <= budget

    tm = n_p = need = None
    for cand in (512, 256, 128):                 # all multiples of 128 (>= bf16 (16,128) tile)
        t = min(cand, n_lane)
        np_ = _round_up(n_lane, t)               # pad rows up to a TM multiple (no tiny fallback)
        nd = _vmem_bytes(t, np_, din_p, hid_p, dout_p, a_resident)
        if nd <= budget:
            tm, n_p, need = t, np_, nd
            break
    if tm is None:                               # huge N: stream with the smallest legal tile
        a_resident = False
        tm = min(128, n_lane)
        n_p = _round_up(n_lane, tm)
        need = _vmem_bytes(tm, n_p, din_p, hid_p, dout_p, a_resident)

    vmem_limit = int(min(max(need + (8 << 20), 32 << 20), int(cap * 0.90)))
    return Plan(n, d_in, hid, d_out, n_p, din_p, hid_p, dout_p, tm, a_resident, vmem_limit)


def prepare_inputs(plan, params, x, a_norm):
    """One-time pad + bf16 cast of all operands (hoisted out of the per-inference path).

    Zero padding keeps the math exact: padded A columns are zero, so the nonzero relu(b1)
    rows of padded h never contribute to layer 2.
    """
    p = plan
    a_p = _pad2d(a_norm, p.n_p, p.n_p).astype(jnp.bfloat16)
    x_p = _pad2d(x, p.n_p, p.din_p).astype(jnp.bfloat16)
    w1l = _pad2d(params["w1_l"], p.din_p, p.hid_p).astype(jnp.bfloat16)
    w1r = _pad2d(params["w1_r"], p.din_p, p.hid_p).astype(jnp.bfloat16)
    w2l = _pad2d(params["w2_l"], p.hid_p, p.dout_p).astype(jnp.bfloat16)
    w2r = _pad2d(params["w2_r"], p.hid_p, p.dout_p).astype(jnp.bfloat16)
    b1 = _pad2d(params["b1"], 1, p.hid_p).astype(jnp.float32)
    b2 = _pad2d(params["b2"], 1, p.dout_p).astype(jnp.float32)
    return a_p, x_p, w1l, w1r, b1, w2l, w2r, b2


def fused_sage_kernel(a_ref, x_ref, w1l_ref, w1r_ref, b1_ref, w2l_ref, w2r_ref, b2_ref,
                      o_ref, h_ref):
    """grid = (layer, row_tile). Layer 0 fills the VMEM-resident h; layer 1 writes the output."""
    layer = pl.program_id(0)
    i = pl.program_id(1)
    tm = o_ref.shape[0]
    row0 = pl.multiple_of(i * tm, tm)

    # a_ref is either the VMEM-resident full (n_p, n_p) adjacency (slice the row tile in-kernel)
    # or a streamed (tm, n_p) row tile.
    if a_ref.shape[0] != tm:
        a_tile = a_ref[pl.ds(row0, tm), :]
    else:
        a_tile = a_ref[...]

    @pl.when(layer == 0)
    def _layer1():
        # mean aggregation over neighbors for this row tile (bf16 MXU, f32 accumulate)
        agg = jnp.dot(a_tile, x_ref[...], preferred_element_type=jnp.float32)
        x_tile = x_ref[pl.ds(row0, tm), :]
        # SAGE projection as two dots summed in f32 (no lane-concat buffer)
        h = (jnp.dot(agg.astype(jnp.bfloat16), w1l_ref[...],
                     preferred_element_type=jnp.float32)
             + jnp.dot(x_tile, w1r_ref[...], preferred_element_type=jnp.float32)
             + b1_ref[...])
        # ReLU; inference dropout = identity
        h_ref[pl.ds(row0, tm), :] = jnp.maximum(h, 0.0).astype(jnp.bfloat16)
        # No o_ref write here: the output index_map maps every layer-0 step to block (0, 0),
        # so the (uninitialized) output buffer is never written back during layer 0.

    @pl.when(layer == 1)
    def _layer2():
        agg = jnp.dot(a_tile, h_ref[...], preferred_element_type=jnp.float32)
        h_tile = h_ref[pl.ds(row0, tm), :]
        out = (jnp.dot(agg.astype(jnp.bfloat16), w2l_ref[...],
                       preferred_element_type=jnp.float32)
               + jnp.dot(h_tile, w2r_ref[...], preferred_element_type=jnp.float32)
               + b2_ref[...])
        o_ref[...] = out.astype(o_ref.dtype)


def sage_forward(plan, a_p, x_p, w1l, w1r, b1, w2l, w2r, b2):
    """Full Net forward (both SAGEConv layers) in one fused pallas_call on prepared inputs."""
    p = plan
    nt = p.n_p // p.tm

    if p.a_resident:
        # Constant window: A is DMA'd HBM->VMEM once and reused by both layers.
        a_spec = pl.BlockSpec((p.n_p, p.n_p), lambda l, i: (0, 0))
    else:
        # Streamed (double-buffered) destination-row tiles; full A read once per layer.
        a_spec = pl.BlockSpec((p.tm, p.n_p), lambda l, i: (i, 0))

    out_p = pl.pallas_call(
        fused_sage_kernel,
        out_shape=jax.ShapeDtypeStruct((p.n_p, p.dout_p), jnp.float32),
        grid_spec=pltpu.PrefetchScalarGridSpec(
            num_scalar_prefetch=0,
            grid=(2, nt),  # layer axis outermost: all layer-0 tiles finish before layer 1 starts
            in_specs=[
                a_spec,
                pl.BlockSpec((p.n_p, p.din_p), lambda l, i: (0, 0)),     # X resident
                pl.BlockSpec((p.din_p, p.hid_p), lambda l, i: (0, 0)),   # W1_l
                pl.BlockSpec((p.din_p, p.hid_p), lambda l, i: (0, 0)),   # W1_r
                pl.BlockSpec((1, p.hid_p), lambda l, i: (0, 0)),         # b1
                pl.BlockSpec((p.hid_p, p.dout_p), lambda l, i: (0, 0)),  # W2_l
                pl.BlockSpec((p.hid_p, p.dout_p), lambda l, i: (0, 0)),  # W2_r
                pl.BlockSpec((1, p.dout_p), lambda l, i: (0, 0)),        # b2
            ],
            # Layer-0 steps collapse onto output block (0, 0): the buffer stays VMEM-resident
            # (never written back) until layer 1 writes every block exactly once.
            out_specs=pl.BlockSpec((p.tm, p.dout_p), lambda l, i: (i * l, 0)),
            scratch_shapes=[pltpu.VMEM((p.n_p, p.hid_p), jnp.bfloat16)],  # hidden acts in VMEM
        ),
        compiler_params=pltpu.CompilerParams(
            # Both axes "arbitrary": layer-2 tiles consume the whole VMEM-resident h, so the
            # row axis cannot be sharded across v7x's two TensorCores in this fused form.
            dimension_semantics=("arbitrary", "arbitrary"),
            vmem_limit_bytes=p.vmem_limit,
        ),
    )(a_p, x_p, w1l, w1r, b1, w2l, w2r, b2)

    return out_p[:p.n, :p.d_out]


def build_normalized_adjacency(edge_index, num_nodes):
    """Dense row-normalized adjacency: A_norm[i, j] = (#msgs j->i) / deg_in(i)."""
    src, dst = edge_index[0], edge_index[1]
    a = jnp.zeros((num_nodes, num_nodes), jnp.float32)
    a = a.at[dst, src].add(1.0)
    deg = jnp.sum(a, axis=1, keepdims=True)
    return a / jnp.maximum(deg, 1.0)


def init_linear(key, d_in, d_out, with_bias):
    """Deterministic Kaiming-uniform-ish init; weight stored as [d_in, d_out]."""
    kw, kb = jax.random.split(key)
    bound = 1.0 / jnp.sqrt(jnp.float32(d_in))
    w = jax.random.uniform(kw, (d_in, d_out), jnp.float32, -bound, bound)
    b = (jax.random.uniform(kb, (1, d_out), jnp.float32, -bound, bound)
         if with_bias else jnp.zeros((1, d_out), jnp.float32))
    return w, b


def ref_forward(params, x, a_norm):
    """Plain-JAX reference mirroring the kernel's bf16 numerics."""
    f32 = jnp.float32
    a = a_norm.astype(jnp.bfloat16).astype(f32)
    xx = x.astype(jnp.bfloat16).astype(f32)
    w1l = params["w1_l"].astype(jnp.bfloat16).astype(f32)
    w1r = params["w1_r"].astype(jnp.bfloat16).astype(f32)
    w2l = params["w2_l"].astype(jnp.bfloat16).astype(f32)
    w2r = params["w2_r"].astype(jnp.bfloat16).astype(f32)

    agg1 = (a @ xx).astype(jnp.bfloat16).astype(f32)
    h = jnp.maximum(agg1 @ w1l + xx @ w1r + params["b1"], 0.0)
    h = h.astype(jnp.bfloat16).astype(f32)

    agg2 = (a @ h).astype(jnp.bfloat16).astype(f32)
    return agg2 @ w2l + h @ w2r + params["b2"]


if __name__ == "__main__":
    key = jax.random.PRNGKey(0)
    k_feat, k_edge, k1l, k1r, k2l, k2r = jax.random.split(key, 6)

    num_nodes = 64
    in_dim, hid_dim, out_dim = 16, 32, 8
    num_edges_directed = 256

    # node features
    x = jax.random.normal(k_feat, (num_nodes, in_dim), jnp.float32)

    # synthetic graph; mirror the module: edges symmetrized (both directions)
    k_src, k_dst = jax.random.split(k_edge)
    row = jax.random.randint(k_src, (num_edges_directed,), 0, num_nodes)
    col = jax.random.randint(k_dst, (num_edges_directed,), 0, num_nodes)
    src_node = jnp.concatenate([row, col], axis=0)
    dst_node = jnp.concatenate([col, row], axis=0)
    edge_index = jnp.stack([src_node, dst_node], axis=0)   # [2, 512]

    a_norm = build_normalized_adjacency(edge_index, num_nodes)

    # SAGEConv params: lin_l has bias, lin_r has no bias (PyG defaults)
    w1_l, b1 = init_linear(k1l, in_dim, hid_dim, with_bias=True)
    w1_r, _ = init_linear(k1r, in_dim, hid_dim, with_bias=False)
    w2_l, b2 = init_linear(k2l, hid_dim, out_dim, with_bias=True)
    w2_r, _ = init_linear(k2r, hid_dim, out_dim, with_bias=False)
    params = dict(w1_l=w1_l, w1_r=w1_r, b1=b1, w2_l=w2_l, w2_r=w2_r, b2=b2)

    # Static plan + one-time prepare (padding / bf16 casts hoisted out of the inference path).
    plan = build_plan(num_nodes, in_dim, hid_dim, out_dim)
    prepared = prepare_inputs(plan, params, x, a_norm)

    fwd = jax.jit(functools.partial(sage_forward, plan))
    out = jax.block_until_ready(fwd(*prepared))

    ref = ref_forward(params, x, a_norm)
    assert out.shape == (num_nodes, out_dim)
    assert jnp.allclose(out, ref, atol=2e-2, rtol=2e-2), float(jnp.max(jnp.abs(out - ref)))

    print("KERNEL_OK")
</pallas_src>

<mosaic_0001>
module attributes {stable_mosaic.version = 11 : i64} {
  func.func @fused_sage_kernel(%arg0: i32, %arg1: i32, %arg2: memref<128x128xbf16, #tpu.memory_space<vmem>>, %arg3: memref<128x128xbf16, #tpu.memory_space<vmem>>, %arg4: memref<128x128xbf16, #tpu.memory_space<vmem>>, %arg5: memref<128x128xbf16, #tpu.memory_space<vmem>>, %arg6: memref<1x128xf32, #tpu.memory_space<vmem>>, %arg7: memref<128x128xbf16, #tpu.memory_space<vmem>>, %arg8: memref<128x128xbf16, #tpu.memory_space<vmem>>, %arg9: memref<1x128xf32, #tpu.memory_space<vmem>>, %arg10: memref<128x128xf32, #tpu.memory_space<vmem>>, %arg11: memref<128x128xbf16, #tpu.memory_space<vmem>>) attributes {dimension_semantics = [#tpu.dimension_semantics<arbitrary>, #tpu.dimension_semantics<arbitrary>], iteration_bounds = array<i64: 2, 1>, scalar_prefetch = 0 : i64, scratch_operands = 1 : i64, tpu.core_type = #tpu.core_type<tc>, window_params = [{pipeline_mode = #tpu.pipeline_mode<synchronous>, transform_indices = @transform_0, window_bounds = array<i64: 128, 128>}, {pipeline_mode = #tpu.pipeline_mode<synchronous>, transform_indices = @transform_1, window_bounds = array<i64: 128, 128>}, {pipeline_mode = #tpu.pipeline_mode<synchronous>, transform_indices = @transform_2, window_bounds = array<i64: 128, 128>}, {pipeline_mode = #tpu.pipeline_mode<synchronous>, transform_indices = @transform_3, window_bounds = array<i64: 128, 128>}, {pipeline_mode = #tpu.pipeline_mode<synchronous>, transform_indices = @transform_4, window_bounds = array<i64: 1, 128>}, {pipeline_mode = #tpu.pipeline_mode<synchronous>, transform_indices = @transform_5, window_bounds = array<i64: 128, 128>}, {pipeline_mode = #tpu.pipeline_mode<synchronous>, transform_indices = @transform_6, window_bounds = array<i64: 128, 128>}, {pipeline_mode = #tpu.pipeline_mode<synchronous>, transform_indices = @transform_7, window_bounds = array<i64: 1, 128>}, {transform_indices = @transform_8, window_bounds = array<i64: 128, 128>}]} {
    %c128_i32 = arith.constant 128 : i32
    %0 = arith.muli %arg1, %c128_i32 : i32
    %1 = tpu.assume_multiple %0, 128 : i32
    %c0 = arith.constant 0 : index
    %c0_0 = arith.constant 0 : index
    %2 = vector.load %arg2[%c0, %c0_0] : memref<128x128xbf16, #tpu.memory_space<vmem>>, vector<128x128xbf16>
    %c0_i32 = arith.constant 0 : i32
    %3 = arith.cmpi eq, %arg0, %c0_i32 : i32
    %4 = arith.extui %3 : i1 to i32
    %c0_i32_1 = arith.constant 0 : i32
    %5 = arith.cmpi ne, %4, %c0_i32_1 : i32
    scf.if %5 {
      %c0_3 = arith.constant 0 : index
      %c0_4 = arith.constant 0 : index
      %9 = vector.load %arg3[%c0_3, %c0_4] : memref<128x128xbf16, #tpu.memory_space<vmem>>, vector<128x128xbf16>
      %cst = arith.constant dense<0.000000e+00> : vector<128x128xf32>
      %10 = tpu.matmul %2, %9, %cst {dimension_numbers = #tpu.dot_dimension_numbers<[1], [0], [0], [1], [0, 0, 1, 1], [], []>} : vector<128x128xbf16>, vector<128x128xbf16>, vector<128x128xf32> -> vector<128x128xf32>
      %11 = arith.index_cast %1 : i32 to index
      %c0_5 = arith.constant 0 : index
      %12 = vector.load %arg3[%11, %c0_5] : memref<128x128xbf16, #tpu.memory_space<vmem>>, vector<128x128xbf16>
      %13 = arith.truncf %10 : vector<128x128xf32> to vector<128x128xbf16>
      %c0_6 = arith.constant 0 : index
      %c0_7 = arith.constant 0 : index
      %14 = vector.load %arg4[%c0_6, %c0_7] : memref<128x128xbf16, #tpu.memory_space<vmem>>, vector<128x128xbf16>
      %cst_8 = arith.constant dense<0.000000e+00> : vector<128x128xf32>
      %15 = tpu.matmul %13, %14, %cst_8 {dimension_numbers = #tpu.dot_dimension_numbers<[1], [0], [0], [1], [0, 0, 1, 1], [], []>} : vector<128x128xbf16>, vector<128x128xbf16>, vector<128x128xf32> -> vector<128x128xf32>
      %c0_9 = arith.constant 0 : index
      %c0_10 = arith.constant 0 : index
      %16 = vector.load %arg5[%c0_9, %c0_10] : memref<128x128xbf16, #tpu.memory_space<vmem>>, vector<128x128xbf16>
      %cst_11 = arith.constant dense<0.000000e+00> : vector<128x128xf32>
      %17 = tpu.matmul %12, %16, %cst_11 {dimension_numbers = #tpu.dot_dimension_numbers<[1], [0], [0], [1], [0, 0, 1, 1], [], []>} : vector<128x128xbf16>, vector<128x128xbf16>, vector<128x128xf32> -> vector<128x128xf32>
      %18 = arith.addf %15, %17 : vector<128x128xf32>
      %c0_12 = arith.constant 0 : index
      %c0_13 = arith.constant 0 : index
      %19 = vector.load %arg6[%c0_12, %c0_13] : memref<1x128xf32, #tpu.memory_space<vmem>>, vector<1x128xf32>
      %20 = vector.broadcast %19 : vector<1x128xf32> to vector<128x128xf32>
      %21 = arith.addf %18, %20 : vector<128x128xf32>
      %cst_14 = arith.constant 0.000000e+00 : f32
      %22 = vector.broadcast %cst_14 : f32 to vector<128x128xf32>
      %23 = arith.maximumf %21, %22 : vector<128x128xf32>
      %24 = arith.truncf %23 : vector<128x128xf32> to vector<128x128xbf16>
      %25 = arith.index_cast %1 : i32 to index
      %c0_15 = arith.constant 0 : index
      %26 = vector.load %arg11[%25, %c0_15] : memref<128x128xbf16, #tpu.memory_space<vmem>>, vector<128x128xbf16>
      tpu.vector_store %arg11[%25, %c0_15], %24 {strides = array<i32>} : memref<128x128xbf16, #tpu.memory_space<vmem>>, vector<128x128xbf16>,
    } else {
    }
    %c1_i32 = arith.constant 1 : i32
    %6 = arith.cmpi eq, %arg0, %c1_i32 : i32
    %7 = arith.extui %6 : i1 to i32
    %c0_i32_2 = arith.constant 0 : i32
    %8 = arith.cmpi ne, %7, %c0_i32_2 : i32
    scf.if %8 {
      %c0_3 = arith.constant 0 : index
      %c0_4 = arith.constant 0 : index
      %9 = vector.load %arg11[%c0_3, %c0_4] : memref<128x128xbf16, #tpu.memory_space<vmem>>, vector<128x128xbf16>
      %cst = arith.constant dense<0.000000e+00> : vector<128x128xf32>
      %10 = tpu.matmul %2, %9, %cst {dimension_numbers = #tpu.dot_dimension_numbers<[1], [0], [0], [1], [0, 0, 1, 1], [], []>} : vector<128x128xbf16>, vector<128x128xbf16>, vector<128x128xf32> -> vector<128x128xf32>
      %11 = arith.index_cast %1 : i32 to index
      %c0_5 = arith.constant 0 : index
      %12 = vector.load %arg11[%11, %c0_5] : memref<128x128xbf16, #tpu.memory_space<vmem>>, vector<128x128xbf16>
      %13 = arith.truncf %10 : vector<128x128xf32> to vector<128x128xbf16>
      %c0_6 = arith.constant 0 : index
      %c0_7 = arith.constant 0 : index
      %14 = vector.load %arg7[%c0_6, %c0_7] : memref<128x128xbf16, #tpu.memory_space<vmem>>, vector<128x128xbf16>
      %cst_8 = arith.constant dense<0.000000e+00> : vector<128x128xf32>
      %15 = tpu.matmul %13, %14, %cst_8 {dimension_numbers = #tpu.dot_dimension_numbers<[1], [0], [0], [1], [0, 0, 1, 1], [], []>} : vector<128x128xbf16>, vector<128x128xbf16>, vector<128x128xf32> -> vector<128x128xf32>
      %c0_9 = arith.constant 0 : index
      %c0_10 = arith.constant 0 : index
      %16 = vector.load %arg8[%c0_9, %c0_10] : memref<128x128xbf16, #tpu.memory_space<vmem>>, vector<128x128xbf16>
      %cst_11 = arith.constant dense<0.000000e+00> : vector<128x128xf32>
      %17 = tpu.matmul %12, %16, %cst_11 {dimension_numbers = #tpu.dot_dimension_numbers<[1], [0], [0], [1], [0, 0, 1, 1], [], []>} : vector<128x128xbf16>, vector<128x128xbf16>, vector<128x128xf32> -> vector<128x128xf32>
      %18 = arith.addf %15, %17 : vector<128x128xf32>
      %c0_12 = arith.constant 0 : index
      %c0_13 = arith.constant 0 : index
      %19 = vector.load %arg9[%c0_12, %c0_13] : memref<1x128xf32, #tpu.memory_space<vmem>>, vector<1x128xf32>
      %20 = vector.broadcast %19 : vector<1x128xf32> to vector<128x128xf32>
      %21 = arith.addf %18, %20 : vector<128x128xf32>
      %c0_14 = arith.constant 0 : index
      %c0_15 = arith.constant 0 : index
      %22 = vector.load %arg10[%c0_14, %c0_15] : memref<128x128xf32, #tpu.memory_space<vmem>>, vector<128x128xf32>
      tpu.vector_store %arg10[%c0_14, %c0_15], %21 {strides = array<i32>} : memref<128x128xf32, #tpu.memory_space<vmem>>, vector<128x128xf32>,
    } else {
    }
    return
  }
  func.func @transform_0(%arg0: i32, %arg1: i32) -> (i32, i32) {
    %c0_i32 = arith.constant 0 : i32
    %c0_i32_0 = arith.constant 0 : i32
    %c0_i32_1 = arith.constant 0 : i32
    return %c0_i32, %c0_i32_0 : i32, i32
  }
  func.func @transform_1(%arg0: i32, %arg1: i32) -> (i32, i32) {
    %c0_i32 = arith.constant 0 : i32
    %c0_i32_0 = arith.constant 0 : i32
    %c0_i32_1 = arith.constant 0 : i32
    return %c0_i32, %c0_i32_0 : i32, i32
  }
  func.func @transform_2(%arg0: i32, %arg1: i32) -> (i32, i32) {
    %c0_i32 = arith.constant 0 : i32
    %c0_i32_0 = arith.constant 0 : i32
    %c0_i32_1 = arith.constant 0 : i32
    return %c0_i32, %c0_i32_0 : i32, i32
  }
  func.func @transform_3(%arg0: i32, %arg1: i32) -> (i32, i32) {
    %c0_i32 = arith.constant 0 : i32
    %c0_i32_0 = arith.constant 0 : i32
    %c0_i32_1 = arith.constant 0 : i32
    return %c0_i32, %c0_i32_0 : i32, i32
  }
  func.func @transform_4(%arg0: i32, %arg1: i32) -> (i32, i32) {
    %c0_i32 = arith.constant 0 : i32
    %c0_i32_0 = arith.constant 0 : i32
    %c0_i32_1 = arith.constant 0 : i32
    return %c0_i32, %c0_i32_0 : i32, i32
  }
  func.func @transform_5(%arg0: i32, %arg1: i32) -> (i32, i32) {
    %c0_i32 = arith.constant 0 : i32
    %c0_i32_0 = arith.constant 0 : i32
    %c0_i32_1 = arith.constant 0 : i32
    return %c0_i32, %c0_i32_0 : i32, i32
  }
  func.func @transform_6(%arg0: i32, %arg1: i32) -> (i32, i32) {
    %c0_i32 = arith.constant 0 : i32
    %c0_i32_0 = arith.constant 0 : i32
    %c0_i32_1 = arith.constant 0 : i32
    return %c0_i32, %c0_i32_0 : i32, i32
  }
  func.func @transform_7(%arg0: i32, %arg1: i32) -> (i32, i32) {
    %c0_i32 = arith.constant 0 : i32
    %c0_i32_0 = arith.constant 0 : i32
    %c0_i32_1 = arith.constant 0 : i32
    return %c0_i32, %c0_i32_0 : i32, i32
  }
  func.func @transform_8(%arg0: i32, %arg1: i32) -> (i32, i32) {
    %0 = arith.muli %arg1, %arg0 : i32
    %c0_i32 = arith.constant 0 : i32
    %c0_i32_0 = arith.constant 0 : i32
    return %0, %c0_i32 : i32, i32
  }
}

</mosaic_0001>

<bundles_post_ra>
// kernel: sage_forward.1
= control target key start
LH: loop header
LB: loop body
LE: loop exit
PB: predicated region body
PF: predicated region fallthrough
CT: control target
= control target key end

     0   :  { %13 = vsyncpa [#allocation4], 0  ;;  %s2726_s0 = inlined_call_operand.hbm [shape: bf16[128,128], index: 0, kind: input, shape index: {}]   ;;  %s2727_s1 = inlined_call_operand.hbm [shape: bf16[128,128], index: 1, kind: input, shape index: {}]   ;;  %s2728_s2 = inlined_call_operand.hbm [shape: bf16[128,128], index: 2, kind: input, shape index: {}]   ;;  %s2729_s3 = inlined_call_operand.hbm [shape: bf16[128,128], index: 3, kind: input, shape index: {}]   ;;  %s2730_s4 = inlined_call_operand.vmem [shape: f32[1,128], index: 4, kind: input, shape index: {}]   ;;  %s2731_s5 = inlined_call_operand.hbm [shape: bf16[128,128], index: 5, kind: input, shape index: {}]   ;;  %s2732_s6 = inlined_call_operand.hbm [shape: bf16[128,128], index: 6, kind: input, shape index: {}]   ;;  %s2733_s7 = inlined_call_operand.vmem [shape: f32[1,128], index: 7, kind: input, shape index: {}]   ;;  %s2734_s8 = inlined_call_operand.vmem [shape: f32[128,128], index: 8, kind: output, shape index: {}]  }
   0x1   :  { %14 = vsyncpa [#allocation6], 0 }
   0x2   :  { %15 = vsyncpa [#allocation9], 0 }
   0x3   :  { %16 = vsyncpa [#allocation12], 0  ;;  %s2462_s27 = smov 0   ;;  %s2464_s28 = smov 0  }
   0x4   :  { %s2466_s29 = smov 0  }
   0x5 LB: > { %s1583_s30 = sadd.s32 4294967295, %s2407_s29   ;;  %p1585_p0 = scmp.ge.s32.totalorder %s2407_s29, 1  ;;  %s2407_s29 = sphi %s2466_s29, %s22_s29   ;;  %s2403_s28 = sphi %s2464_s28, %s2739_s28   ;;  %s2399_s27 = sphi %s2462_s27, %s2738_s27  }
   0x6   : > { %p235_p1 = scmp.lt.s32.totalorder %s2407_s29, 3  ;;  %p2480_p2 = scmp.eq.s32.totalorder %s1583_s30, 0 }
   0x7   : > { %s260_s12 = sshll.u32 %s2727_s1, 4  ;;  %s288_s16 = sshll.u32 %s2729_s3, 4  ;;  %s261_s12 = int_to_ptr.hbm [resolvable:$true] %s260_s12  ;;  %s289_s16 = int_to_ptr.hbm [resolvable:$true] %s288_s16 }
   0x8   : > { %p2487_p3 = pnand %p1585_p0, %p235_p1  ;;  %s2409_s17 = smov [#allocation5]  }
   0x9   : > { %s262_s18 = sshll.u32 %s2409_s17, 4  ;;  %s2410_s20 = smov [#allocation8]   ;;  %s263_s18 = int_to_ptr.vmem [resolvable:$true] %s262_s18 }
   0xa   : > { %p2124_p4 = pneg %p2487_p3  ;;  %s290_s21 = sshll.u32 %s2410_s20, 4  ;;  %s291_s21 = int_to_ptr.vmem [resolvable:$true] %s290_s21 }
   0xb   : > { %s2411_s22 = smov 64   ;;  %s2412_s23 = smov 4  }
   0xc   : > { %p2498_p5 = pnand %p2480_p2, %p2124_p4  ;;  %s246_s26 = sshll.u32 %s2726_s0, 4  ;;  %s247_s26 = int_to_ptr.hbm [resolvable:$true] %s246_s26 }
   0xd   : > { %s34_s30 = sadd.s32 1, %s2403_s28  ;;  %s2413_s10 = smov [#allocation3]  }
   0xe   : > { %2130 = dma.hbm_to_vmem [thread:$0]  (!%p2498_p5), %s261_s12, 1024, %s263_s18, [#allocation6], %s2411_s22, %s2411_s22, %s2412_s23  }
   0xf   : > { %2136 = dma.hbm_to_vmem [thread:$0]  (!%p2498_p5), %s289_s16, 1024, %s291_s21, [#allocation9], %s2411_s22, %s2411_s22, %s2412_s23  }
  0x10   : > { %p36_p6 = scmp.ge.s32.totalorder %s34_s30, 2  ;;  %s248_s11 = sshll.u32 %s2413_s10, 4  ;;  %s249_s11 = int_to_ptr.vmem [resolvable:$true] %s248_s11 }
  0x11   : > { %s274_s12 = sshll.u32 %s2728_s2, 4  ;;  %s305_s18 = sshll.u32 %s2731_s5, 4  ;;  %s275_s12 = int_to_ptr.hbm [resolvable:$true] %s274_s12  ;;  %s306_s18 = int_to_ptr.hbm [resolvable:$true] %s305_s18 }
  0x12   : > { %s2741_s30 = smov (%p36_p6, %s34_s30), 0  ;;  %s2414_s20 = smov [#allocation7]  }
  0x13   : > { %2127 = dma.hbm_to_vmem [thread:$0]  (!%p2498_p5), %s247_s26, 1024, %s249_s11, [#allocation4], %s2411_s22, %s2411_s22, %s2412_s23  }
  0x14   : > { %s276_s21 = sshll.u32 %s2414_s20, 4  ;;  %s2415_s24 = smov [#allocation10]   ;;  %s277_s21 = int_to_ptr.vmem [resolvable:$true] %s276_s21 }
  0x15   : > { %2133 = dma.hbm_to_vmem [thread:$0]  (!%p2498_p5), %s275_s12, 1024, %s277_s21, [#allocation6], %s2411_s22, %s2411_s22, %s2412_s23  }
  0x16   : > { %s307_s25 = sshll.u32 %s2415_s24, 4  ;;  %s319_s26 = sshll.u32 %s2732_s6, 4  ;;  %s308_s25 = int_to_ptr.vmem [resolvable:$true] %s307_s25  ;;  %s320_s26 = int_to_ptr.hbm [resolvable:$true] %s319_s26 }
  0x17   : > { %2139 = dma.hbm_to_vmem [thread:$0]  (!%p2498_p5), %s306_s18, 1024, %s308_s25, [#allocation9], %s2411_s22, %s2411_s22, %s2412_s23  }
  0x18   : > { %s2416_s11 = smov [#allocation11]   ;;  %340 = sbr.rel (%p2487_p3) target bundleno = 850 (0x352), region = 52 }
  0x19   : > { %s321_s15 = sshll.u32 %s2416_s11, 4  ;;  %s322_s15 = int_to_ptr.vmem [resolvable:$true] %s321_s15 }
  0x1a   : > { %2142 = dma.hbm_to_vmem [thread:$0]  (!%p2498_p5), %s320_s26, 1024, %s322_s15, [#allocation12], %s2411_s22, %s2411_s22, %s2412_s23  }
  0x1d   : > { %2382 = dma.done.wait (%p2480_p2), [#allocation4], 1024  }
  0x1e   : > { %2384 = vsyncadd (%p2480_p2), [#allocation4], 4294966272 }
  0x1f   : > { %2386 = dma.done.wait (%p2480_p2), [#allocation6], 2048  }
  0x20   : > { %2388 = vsyncadd (%p2480_p2), [#allocation6], 4294965248 }
  0x21   : > { %2390 = dma.done.wait (%p2480_p2), [#allocation9], 2048  }
  0x22   : > { %2392 = vsyncadd (%p2480_p2), [#allocation9], 4294965248 }
  0x23   : > { %2394 = dma.done.wait (%p2480_p2), [#allocation12], 1024  }
  0x24   : > { %2396 = vsyncadd (%p2480_p2), [#allocation12], 4294966272  ;;  %v2565_v0 = vld [vmem:[#allocation3] sm:$0xf]  ;;  %v2567_v2 = vld [vmem:[#allocation3] sm:$0xf0] }
  0x25   : > { %v1602_v1 = vld [vmem:[#allocation3] sm:$0xf]  ;;  %v1926_v3 = vld [vmem:[#allocation3] sm:$0xf0]  ;;  %v2569_v4 = vld [vmem:[#allocation3 + $0x8] sm:$0xf] }
  0x26   : > { %v1606_v5 = vld [vmem:[#allocation3 + $0x8] sm:$0xf]  ;;  %v2571_v6 = vld [vmem:[#allocation3 + $0x8] sm:$0xf0]  ;;  %v2573_v8 = vld [vmem:[#allocation3 + $0x10] sm:$0xf] }
  0x27   : > { %v1928_v7 = vld [vmem:[#allocation3 + $0x8] sm:$0xf0]  ;;  %v1610_v9 = vld [vmem:[#allocation3 + $0x10] sm:$0xf]  ;;  %v2575_v10 = vld [vmem:[#allocation3 + $0x10] sm:$0xf0] }
  0x28   : > { %v1930_v11 = vld [vmem:[#allocation3 + $0x10] sm:$0xf0]  ;;  %v2577_v12 = vld [vmem:[#allocation3 + $0x18] sm:$0xf]  ;;  %v2579_v14 = vld [vmem:[#allocation3 + $0x18] sm:$0xf0] }
  0x29   : > { %v1614_v13 = vld [vmem:[#allocation3 + $0x18] sm:$0xf]  ;;  %v1932_v15 = vld [vmem:[#allocation3 + $0x18] sm:$0xf0]  ;;  %v2581_v16 = vld [vmem:[#allocation3 + $0x20] sm:$0xf] }
  0x2a   : > { %v2583_v17 = vld [vmem:[#allocation3 + $0x20] sm:$0xf]  ;;  %v2585_v18 = vld [vmem:[#allocation3 + $0x20] sm:$0xf0]  ;;  %v2589_v20 = vld [vmem:[#allocation3 + $0x28] sm:$0xf] }
  0x2b   : > { %v2587_v19 = vld [vmem:[#allocation3 + $0x20] sm:$0xf0]  ;;  %v2591_v21 = vld [vmem:[#allocation3 + $0x28] sm:$0xf]  ;;  %v2593_v22 = vld [vmem:[#allocation3 + $0x28] sm:$0xf0] }
  0x2c   : > { %v2595_v23 = vld [vmem:[#allocation3 + $0x28] sm:$0xf0]  ;;  %v2597_v24 = vld [vmem:[#allocation3 + $0x30] sm:$0xf]  ;;  %v2599_v26 = vld [vmem:[#allocation3 + $0x30] sm:$0xf0] }
  0x2d   : > { %v1626_v25 = vld [vmem:[#allocation3 + $0x30] sm:$0xf]  ;;  %v1938_v27 = vld [vmem:[#allocation3 + $0x30] sm:$0xf0]  ;;  %v2601_v28 = vld [vmem:[#allocation3 + $0x38] sm:$0xf] }
  0x2e   : > { %v1630_v29 = vld [vmem:[#allocation3 + $0x38] sm:$0xf]  ;;  %v2603_v30 = vld [vmem:[#allocation3 + $0x38] sm:$0xf0]  ;;  %p1599_p7 = scmp.ne.s32.totalorder %s2399_s27, 0 }
  0x2f   : > { %v1940_v31 = vld [vmem:[#allocation3 + $0x38] sm:$0xf0] }
  0x30   : > { %424 = sbr.rel (%p1599_p7) target bundleno = 450 (0x1c2), region = 80 }
  0x35   : > { %v1948_v32 = vld [vmem:[#allocation5 + $0x38] sm:$0xff]  ;;  %v1947_v33 = vld [vmem:[#allocation5 + $0x30] sm:$0xff]  ;;  %v1946_v34 = vld [vmem:[#allocation5 + $0x28] sm:$0xff]  ;;  %v1603_v40 = vor.u32 %v1926_v3, %v1602_v1  ;;  %v1627_v41 = vor.u32 %v1938_v27, %v1626_v25  ;;  %v1607_v42 = vor.u32 %v1928_v7, %v1606_v5  ;;  %v1631_v43 = vor.u32 %v1940_v31, %v1630_v29 }
  0x36   : > { %537 = vmatpush.bf16.msra.mxu0 %v1948_v32  ;;  %2052 = vmatpush.bf16.msra.mxu3 %v1948_v32  ;;  %v1945_v35 = vld [vmem:[#allocation5 + $0x20] sm:$0xff]  ;;  %v1944_v36 = vld [vmem:[#allocation5 + $0x18] sm:$0xff]  ;;  %v1943_v37 = vld [vmem:[#allocation5 + $0x10] sm:$0xff]  ;;  %v1611_v44 = vor.u32 %v1930_v11, %v1610_v9  ;;  %v1615_v45 = vor.u32 %v1932_v15, %v1614_v13  ;;  %v1619_v54 = vor.u32 %v2587_v19, %v2583_v17 }
  0x37   : > { %v1942_v38 = vld [vmem:[#allocation5 + $0x8] sm:$0xff]  ;;  %v1941_v39 = vld [vmem:[#allocation5] sm:$0xff]  ;;  %v1972_v46 = vld [vmem:[#allocation8 + $0x38] sm:$0xff]  ;;  %v1623_v59 = vor.u32 %v2595_v23, %v2591_v21 }
  0x38   : > { %v1964_v47 = vld [vmem:[#allocation7 + $0x38] sm:$0xff]  ;;  %v1971_v48 = vld [vmem:[#allocation8 + $0x30] sm:$0xff]  ;;  %742 = vmatpush.bf16.msra.mxu1 %v1972_v46  ;;  %v1970_v50 = vld [vmem:[#allocation8 + $0x28] sm:$0xff] }
  0x39   : > { %839 = vmatpush.bf16.msra.mxu2 %v1964_v47  ;;  %v1963_v49 = vld [vmem:[#allocation7 + $0x30] sm:$0xff]  ;;  %v1962_v51 = vld [vmem:[#allocation7 + $0x28] sm:$0xff]  ;;  %v1969_v52 = vld [vmem:[#allocation8 + $0x20] sm:$0xff] }
  0x3a   : > { %538 = vmatpush.bf16.msra.mxu0 %v1947_v33  ;;  %2053 = vmatpush.bf16.msra.mxu3 %v1947_v33  ;;  %v1961_v53 = vld [vmem:[#allocation7 + $0x20] sm:$0xff]  ;;  %v1968_v55 = vld [vmem:[#allocation8 + $0x18] sm:$0xff]  ;;  %v1967_v57 = vld [vmem:[#allocation8 + $0x10] sm:$0xff] }
  0x3b   : > { %v1960_v56 = vld [vmem:[#allocation7 + $0x18] sm:$0xff]  ;;  %v1966_v58 = vld [vmem:[#allocation8 + $0x8] sm:$0xff]  ;;  %v1965_v60 = vld [vmem:[#allocation8] sm:$0xff] }
  0x3c   : > { %743 = vmatpush.bf16.msra.mxu1 %v1971_v48  ;;  %v1959_v61 = vld [vmem:[#allocation7 + $0x10] sm:$0xff]  ;;  %v1958_v63 = vld [vmem:[#allocation7 + $0x8] sm:$0xff]  ;;  %v1957_v1 = vld [vmem:[#allocation7] sm:$0xff] }
  0x3d   : > { %840 = vmatpush.bf16.msra.mxu2 %v1963_v49  ;;  %v1955_v62 = vld [vmem:[#allocation5 + $0x30] sm:$0xff]  ;;  %v1949_v3 = vld [vmem:[#allocation5] sm:$0xff]  ;;  %v1956_v5 = vld [vmem:[#allocation5 + $0x38] sm:$0xff] }
  0x3e   : > { %539 = vmatpush.bf16.msra.mxu0 %v1946_v34  ;;  %2054 = vmatpush.bf16.msra.mxu3 %v1946_v34  ;;  %v1950_v7 = vld [vmem:[#allocation5 + $0x8] sm:$0xff]  ;;  %v1951_v13 = vld [vmem:[#allocation5 + $0x10] sm:$0xff]  ;;  %v1952_v27 = vld [vmem:[#allocation5 + $0x18] sm:$0xff] }
  0x40   : > { %744 = vmatpush.bf16.msra.mxu1 %v1970_v50 }
  0x41   : > { %841 = vmatpush.bf16.msra.mxu2 %v1962_v51 }
  0x42   : > { %540 = vmatpush.bf16.msra.mxu0 %v1945_v35  ;;  %2055 = vmatpush.bf16.msra.mxu3 %v1945_v35  ;;  %v1953_v35 = vld [vmem:[#allocation5 + $0x20] sm:$0xff] }
  0x44   : > { %745 = vmatpush.bf16.msra.mxu1 %v1969_v52 }
  0x45   : > { %842 = vmatpush.bf16.msra.mxu2 %v1961_v53 }
  0x46   : > { %541 = vmatpush.bf16.msra.mxu0 %v1944_v36  ;;  %2056 = vmatpush.bf16.msra.mxu3 %v1944_v36 }
  0x48   : > { %746 = vmatpush.bf16.msra.mxu1 %v1968_v55 }
  0x49   : > { %843 = vmatpush.bf16.msra.mxu2 %v1960_v56 }
  0x4a   : > { %542 = vmatpush.bf16.msra.mxu0 %v1943_v37  ;;  %2057 = vmatpush.bf16.msra.mxu3 %v1943_v37 }
  0x4c   : > { %747 = vmatpush.bf16.msra.mxu1 %v1967_v57 }
  0x4d   : > { %844 = vmatpush.bf16.msra.mxu2 %v1959_v61 }
  0x4e   : > { %543 = vmatpush.bf16.msra.mxu0 %v1942_v38  ;;  %2058 = vmatpush.bf16.msra.mxu3 %v1942_v38 }
  0x50   : > { %748 = vmatpush.bf16.msra.mxu1 %v1966_v58 }
  0x51   : > { %845 = vmatpush.bf16.msra.mxu2 %v1958_v63 }
  0x52   : > { %544 = vmatpush.bf16.msra.mxu0 %v1941_v39  ;;  %2059 = vmatpush.bf16.msra.mxu3 %v1941_v39  ;;  %v1954_v39 = vld [vmem:[#allocation5 + $0x28] sm:$0xff] }
  0x54   : > { %749 = vmatpush.bf16.msra.mxu1 %v1965_v60 }
  0x55   : > { %545 = vmatmul.bf16.vlgmr.msra.gmra.mxu0 %v1603_v40  ;;  %575 = vmatmul.bf16.vlgmr.msra.gmra.mxu3 %v1627_v41 }
  0x56   : > { %2060 = vmatpush.bf16.msrb.mxu3 %v1972_v46  ;;  %846 = vmatpush.bf16.msra.mxu2 %v1957_v1 }
  0x57   : > { %750 = vmatmul.bf16.vlgmr.msra.gmra.mxu1 %v1949_v3 }
  0x5a   : > { %2061 = vmatpush.bf16.msrb.mxu3 %v1971_v48 }
  0x5e   : > { %2062 = vmatpush.bf16.msrb.mxu3 %v1970_v50 }
  0x62   : > { %2063 = vmatpush.bf16.msrb.mxu3 %v1969_v52 }
  0x65   : > { %550 = vmatmul.bf16.gmra.mxu0 %v1607_v42  ;;  %580 = vmatmul.bf16.gmra.mxu3 %v1631_v43 }
  0x66   : > { %2064 = vmatpush.bf16.msrb.mxu3 %v1968_v55 }
  0x67   : > { %755 = vmatmul.bf16.gmra.mxu1 %v1950_v7 }
  0x6a   : > { %2065 = vmatpush.bf16.msrb.mxu3 %v1967_v57  ;;  %v2613_v57 = vld [vmem:[%s2730_s4] ss:$0 sm:$0xff] }
  0x6e   : > { %2066 = vmatpush.bf16.msrb.mxu3 %v1966_v58 }
  0x72   : > { %2067 = vmatpush.bf16.msrb.mxu3 %v1965_v60 }
  0x75   : > { %555 = vmatmul.bf16.gmra.mxu0 %v1611_v44  ;;  %780 = vmatmul.bf16.vlgmr.msrb.gmra.mxu3 %v1955_v62 }
  0x76   : > { %2068 = vmatpush.bf16.msra.mxu3 %v1964_v47 }
  0x77   : > { %760 = vmatmul.bf16.gmra.mxu1 %v1951_v13 }
  0x7a   : > { %2069 = vmatpush.bf16.msra.mxu3 %v1963_v49 }
  0x7e   : > { %2070 = vmatpush.bf16.msra.mxu3 %v1962_v51 }
  0x82   : > { %2071 = vmatpush.bf16.msra.mxu3 %v1961_v53 }
  0x85   : > { %560 = vmatmul.bf16.gmra.mxu0 %v1615_v45  ;;  %785 = vmatmul.bf16.gmra.mxu3 %v1956_v5 }
  0x86   : > { %2072 = vmatpush.bf16.msra.mxu3 %v1960_v56 }
  0x87   : > { %765 = vmatmul.bf16.gmra.mxu1 %v1952_v27 }
  0x8a   : > { %2073 = vmatpush.bf16.msra.mxu3 %v1959_v61 }
  0x8e   : > { %2074 = vmatpush.bf16.msra.mxu3 %v1958_v63 }
  0x92   : > { %2075 = vmatpush.bf16.msra.mxu3 %v1957_v1 }
  0x95   : > { %565 = vmatmul.bf16.gmra.mxu0 %v1619_v54 }
  0x97   : > { %770 = vmatmul.bf16.gmra.mxu1 %v1953_v35 }
  0xa5   : > { %570 = vmatmul.bf16.gmra.mxu0 %v1623_v59 }
  0xa7   : > { %775 = vmatmul.bf16.gmra.mxu1 %v1954_v39 }
  0xd2   : > { %v546_v9 = vpop.f32.mrf.mxu0 }
  0xd4   : > { %v751_v50 = vpop.f32.mrf.mxu1 }
  0xd8   : > { %v576_v11 = vpop.f32.mrf.mxu3 }
  0xda   : > { %v548_v15 = vpop.f32.mrf.mxu0 }
  0xdb   : > { %v606_v17 = vpack.c.bf16 %v548_v15, %v546_v9 }
  0xdc   : > { %v753_v52 = vpop.f32.mrf.mxu1 }
  0xdd   : > { %847 = vmatmul.bf16.vlgmr.msra.gmra.mxu2 %v606_v17 }
  0xe0   : > { %v578_v19 = vpop.f32.mrf.mxu3 }
  0xe1   : > { %v612_v21 = vpack.c.bf16 %v578_v19, %v576_v11 }
  0xe2   : > { %v551_v23 = vpop.f32.mrf.mxu0 }
  0xe3   : > { %877 = vmatmul.bf16.vlgmr.msra.gmra.mxu3 %v612_v21 }
  0xe4   : > { %v756_v54 = vpop.f32.mrf.mxu1 }
  0xe8   : > { %v581_v25 = vpop.f32.mrf.mxu3 }
  0xea   : > { %v553_v29 = vpop.f32.mrf.mxu0 }
  0xeb   : > { %v607_v31 = vpack.c.bf16 %v553_v29, %v551_v23 }
  0xec   : > { %v758_v60 = vpop.f32.mrf.mxu1 }
  0xed   : > { %852 = vmatmul.bf16.gmra.mxu2 %v607_v31 }
  0xf0   : > { %v583_v32 = vpop.f32.mrf.mxu3 }
  0xf1   : > { %v613_v33 = vpack.c.bf16 %v583_v32, %v581_v25 }
  0xf2   : > { %v556_v34 = vpop.f32.mrf.mxu0 }
  0xf3   : > { %882 = vmatmul.bf16.gmra.mxu3 %v613_v33 }
  0xf4   : > { %v761_v21 = vpop.f32.mrf.mxu1 }
  0xf8   : > { %v781_v48 = vpop.f32.mrf.mxu3 }
  0xfa   : > { %v558_v36 = vpop.f32.mrf.mxu0 }
  0xfb   : > { %v608_v37 = vpack.c.bf16 %v558_v36, %v556_v34 }
  0xfc   : > { %v763_v36 = vpop.f32.mrf.mxu1 }
  0xfd   : > { %857 = vmatmul.bf16.gmra.mxu2 %v608_v37 }
 0x100   : > { %v783_v49 = vpop.f32.mrf.mxu3 }
 0x102   : > { %v561_v38 = vpop.f32.mrf.mxu0 }
 0x108   : > { %v786_v51 = vpop.f32.mrf.mxu3 }
 0x10a   : > { %v563_v40 = vpop.f32.mrf.mxu0 }
 0x10b   : > { %v609_v41 = vpack.c.bf16 %v563_v40, %v561_v38 }
 0x10d   : > { %862 = vmatmul.bf16.gmra.mxu2 %v609_v41 }
 0x110   : > { %v788_v53 = vpop.f32.mrf.mxu3 }
 0x112   : > { %v566_v42 = vpop.f32.mrf.mxu0 }
 0x11a   : > { %v568_v43 = vpop.f32.mrf.mxu0 }
 0x11b   : > { %v610_v44 = vpack.c.bf16 %v568_v43, %v566_v42 }
 0x11d   : > { %867 = vmatmul.bf16.gmra.mxu2 %v610_v44 }
 0x122   : > { %v571_v45 = vpop.f32.mrf.mxu0 }
 0x12a   : > { %v573_v46 = vpop.f32.mrf.mxu0 }
 0x12b   : > { %v611_v47 = vpack.c.bf16 %v573_v46, %v571_v45 }
 0x12d   : > { %872 = vmatmul.bf16.gmra.mxu2 %v611_v47 }
 0x160   : > { %v848_v55 = vpop.f32.mrf.mxu2 }
 0x161   : > { %v849_v56 = vadd.f32 %v848_v55, %v751_v50 }
 0x163   : > { %v892_v61 = vadd.f32 %v2613_v57, %v849_v56 }
 0x165   : > { %v908_v3 = vmax.f32 %v892_v61, 0.0 }
 0x166   : > { %v878_v58 = vpop.f32.mrf.mxu3 }
 0x167   : > { %v879_v63 = vadd.f32 %v878_v58, %v781_v48 }
 0x168   : > { %v850_v59 = vpop.f32.mrf.mxu2 }
 0x169   : > { %v851_v62 = vadd.f32 %v850_v59, %v753_v52  ;;  %v904_v7 = vadd.f32 %v2613_v57, %v879_v63 }
 0x16b   : > { %v893_v1 = vadd.f32 %v2613_v57, %v851_v62  ;;  %v920_v17 = vmax.f32 %v904_v7, 0.0 }
 0x16d   : > { %v909_v5 = vmax.f32 %v893_v1, 0.0 }
 0x16e   : > { %v880_v9 = vpop.f32.mrf.mxu3 }
 0x16f   : > { %v2008_v11 = vpack.c.bf16 %v909_v5, %v908_v3  ;;  %v881_v13 = vadd.f32 %v880_v9, %v783_v49  ;;  %v766_v49 = vpop.f32.mrf.mxu1 }
 0x170   : > { %v853_v15 = vpop.f32.mrf.mxu2 }
 0x171   : > { %2009 = vst [vmem:[#allocation2 + $0x30] sm:$0xff] %v2008_v11   ;;  %v905_v19 = vadd.f32 %v2613_v57, %v881_v13  ;;  %v854_v25 = vadd.f32 %v853_v15, %v756_v54 }
 0x173   : > { %v921_v23 = vmax.f32 %v905_v19, 0.0  ;;  %v894_v32 = vadd.f32 %v2613_v57, %v854_v25 }
 0x175   : > { %v2038_v27 = vpack.c.bf16 %v921_v23, %v920_v17  ;;  %v910_v37 = vmax.f32 %v894_v32, 0.0 }
 0x176   : > { %v883_v29 = vpop.f32.mrf.mxu3 }
 0x177   : > { %2050 = vst [vmem:[#allocation2 + $0x28] sm:$0xff] %v2038_v27   ;;  %v884_v34 = vadd.f32 %v883_v29, %v786_v51 }
 0x178   : > { %v855_v31 = vpop.f32.mrf.mxu2 }
 0x179   : > { %v856_v33 = vadd.f32 %v855_v31, %v758_v60  ;;  %v906_v39 = vadd.f32 %v2613_v57, %v884_v34 }
 0x17b   : > { %v895_v35 = vadd.f32 %v2613_v57, %v856_v33  ;;  %v922_v44 = vmax.f32 %v906_v39, 0.0 }
 0x17d   : > { %v911_v38 = vmax.f32 %v895_v35, 0.0 }
 0x17e   : > { %v885_v40 = vpop.f32.mrf.mxu3 }
 0x17f   : > { %v2013_v41 = vpack.c.bf16 %v911_v38, %v910_v37  ;;  %v886_v42 = vadd.f32 %v885_v40, %v788_v53  ;;  %v768_v53 = vpop.f32.mrf.mxu1 }
 0x180   : > { %v858_v43 = vpop.f32.mrf.mxu2 }
 0x181   : > { %2045 = vst [vmem:[#allocation2] sm:$0xff] %v2013_v41   ;;  %v907_v45 = vadd.f32 %v2613_v57, %v886_v42  ;;  %v859_v47 = vadd.f32 %v858_v43, %v761_v21 }
 0x183   : > { %v923_v46 = vmax.f32 %v907_v45, 0.0  ;;  %v896_v51 = vadd.f32 %v2613_v57, %v859_v47 }
 0x185   : > { %v2043_v48 = vpack.c.bf16 %v923_v46, %v922_v44  ;;  %v912_v55 = vmax.f32 %v896_v51, 0.0 }
 0x187   : > { %2051 = vst [vmem:[#allocation2 + $0x38] sm:$0xff] %v2043_v48   ;;  %v771_v1 = vpop.f32.mrf.mxu1 }
 0x188   : > { %v860_v50 = vpop.f32.mrf.mxu2 }
 0x189   : > { %v861_v52 = vadd.f32 %v860_v50, %v763_v36 }
 0x18b   : > { %v897_v54 = vadd.f32 %v2613_v57, %v861_v52 }
 0x18d   : > { %v913_v56 = vmax.f32 %v897_v54, 0.0 }
 0x18f   : > { %v2018_v58 = vpack.c.bf16 %v913_v56, %v912_v55  ;;  %v773_v13 = vpop.f32.mrf.mxu1 }
 0x190   : > { %v863_v59 = vpop.f32.mrf.mxu2 }
 0x191   : > { %2046 = vst [vmem:[#allocation2 + $0x18] sm:$0xff] %v2018_v58   ;;  %v864_v60 = vadd.f32 %v863_v59, %v766_v49 }
 0x193   : > { %v898_v62 = vadd.f32 %v2613_v57, %v864_v60 }
 0x195   : > { %v914_v5 = vmax.f32 %v898_v62, 0.0 }
 0x197   : > { %v776_v29 = vpop.f32.mrf.mxu1 }
 0x198   : > { %v865_v61 = vpop.f32.mrf.mxu2 }
 0x199   : > { %v866_v63 = vadd.f32 %v865_v61, %v768_v53 }
 0x19b   : > { %v899_v3 = vadd.f32 %v2613_v57, %v866_v63 }
 0x19d   : > { %v915_v7 = vmax.f32 %v899_v3, 0.0 }
 0x19f   : > { %v2023_v9 = vpack.c.bf16 %v915_v7, %v914_v5  ;;  %v778_v34 = vpop.f32.mrf.mxu1 }
 0x1a0   : > { %v868_v11 = vpop.f32.mrf.mxu2 }
 0x1a1   : > { %2047 = vst [vmem:[#allocation2 + $0x10] sm:$0xff] %v2023_v9   ;;  %v869_v15 = vadd.f32 %v868_v11, %v771_v1 }
 0x1a3   : > { %v900_v19 = vadd.f32 %v2613_v57, %v869_v15 }
 0x1a5   : > { %v916_v25 = vmax.f32 %v900_v19, 0.0 }
 0x1a8   : > { %v870_v17 = vpop.f32.mrf.mxu2 }
 0x1a9   : > { %v871_v21 = vadd.f32 %v870_v17, %v773_v13 }
 0x1ab   : > { %v901_v23 = vadd.f32 %v2613_v57, %v871_v21 }
 0x1ad   : > { %v917_v27 = vmax.f32 %v901_v23, 0.0 }
 0x1af   : > { %v2028_v31 = vpack.c.bf16 %v917_v27, %v916_v25 }
 0x1b0   : > { %v873_v32 = vpop.f32.mrf.mxu2 }
 0x1b1   : > { %2048 = vst [vmem:[#allocation2 + $0x8] sm:$0xff] %v2028_v31   ;;  %v874_v33 = vadd.f32 %v873_v32, %v776_v29 }
 0x1b3   : > { %v902_v36 = vadd.f32 %v2613_v57, %v874_v33 }
 0x1b5   : > { %v918_v39 = vmax.f32 %v902_v36, 0.0 }
 0x1b8   : > { %v875_v35 = vpop.f32.mrf.mxu2 }
 0x1b9   : > { %v876_v37 = vadd.f32 %v875_v35, %v778_v34 }
 0x1bb   : > { %v903_v38 = vadd.f32 %v2613_v57, %v876_v37 }
 0x1bd   : > { %v919_v40 = vmax.f32 %v903_v38, 0.0 }
 0x1bf   : > { %v2033_v41 = vpack.c.bf16 %v919_v40, %v918_v39 }
 0x1c1   : > { %2049 = vst [vmem:[#allocation2 + $0x20] sm:$0xff] %v2033_v41  }
 0x1c2 PF: > { %p1760_p8 = scmp.ne.s32.totalorder %s2399_s27, 1 }
 0x1c4   : > { %961 = sbr.rel (%p1760_p8) target bundleno = 850 (0x352), region = 84 }
 0x1c9   : > { %v1980_v42 = vld [vmem:[#allocation2 + $0x38] sm:$0xff]  ;;  %v1979_v43 = vld [vmem:[#allocation2 + $0x28] sm:$0xff]  ;;  %v1978_v44 = vld [vmem:[#allocation2 + $0x20] sm:$0xff]  ;;  %v1764_v49 = vor.u32 %v2567_v2, %v2565_v0  ;;  %v1788_v50 = vor.u32 %v2599_v26, %v2597_v24  ;;  %v1768_v51 = vor.u32 %v2571_v6, %v2569_v4  ;;  %v1792_v52 = vor.u32 %v2603_v30, %v2601_v28 }
 0x1ca   : > { %1074 = vmatpush.bf16.msra.mxu0 %v1980_v42  ;;  %2076 = vmatpush.bf16.msra.mxu3 %v1980_v42  ;;  %v1977_v45 = vld [vmem:[#allocation2 + $0x8] sm:$0xff]  ;;  %v1976_v57 = vld [vmem:[#allocation2 + $0x10] sm:$0xff]  ;;  %v1975_v46 = vld [vmem:[#allocation2 + $0x18] sm:$0xff]  ;;  %v1772_v54 = vor.u32 %v2575_v10, %v2573_v8  ;;  %v1776_v0 = vor.u32 %v2579_v14, %v2577_v12  ;;  %v1780_v10 = vor.u32 %v2585_v18, %v2581_v16 }
 0x1cb   : > { %v1974_v47 = vld [vmem:[#allocation2] sm:$0xff]  ;;  %v1973_v48 = vld [vmem:[#allocation2 + $0x30] sm:$0xff]  ;;  %v2004_v2 = vld [vmem:[#allocation11 + $0x38] sm:$0xff]  ;;  %v1784_v58 = vor.u32 %v2593_v22, %v2589_v20 }
 0x1cc   : > { %v1996_v24 = vld [vmem:[#allocation10 + $0x38] sm:$0xff]  ;;  %v2003_v26 = vld [vmem:[#allocation11 + $0x30] sm:$0xff]  ;;  %1279 = vmatpush.bf16.msra.mxu1 %v2004_v2  ;;  %v2002_v6 = vld [vmem:[#allocation11 + $0x28] sm:$0xff] }
 0x1cd   : > { %1376 = vmatpush.bf16.msra.mxu2 %v1996_v24  ;;  %v1995_v4 = vld [vmem:[#allocation10 + $0x30] sm:$0xff]  ;;  %v1994_v28 = vld [vmem:[#allocation10 + $0x28] sm:$0xff]  ;;  %v2001_v30 = vld [vmem:[#allocation11 + $0x20] sm:$0xff] }
 0x1ce   : > { %1075 = vmatpush.bf16.msra.mxu0 %v1979_v43  ;;  %2077 = vmatpush.bf16.msra.mxu3 %v1979_v43  ;;  %v1993_v8 = vld [vmem:[#allocation10 + $0x20] sm:$0xff]  ;;  %v2000_v12 = vld [vmem:[#allocation11 + $0x18] sm:$0xff]  ;;  %v1999_v55 = vld [vmem:[#allocation11 + $0x10] sm:$0xff] }
 0x1cf   : > { %v1992_v14 = vld [vmem:[#allocation10 + $0x18] sm:$0xff]  ;;  %v1998_v56 = vld [vmem:[#allocation11 + $0x8] sm:$0xff]  ;;  %v1997_v16 = vld [vmem:[#allocation11] sm:$0xff] }
 0x1d0   : > { %1280 = vmatpush.bf16.msra.mxu1 %v2003_v26  ;;  %v1991_v18 = vld [vmem:[#allocation10 + $0x10] sm:$0xff]  ;;  %v1987_v53 = vld [vmem:[#allocation2 + $0x28] sm:$0xff]  ;;  %v1989_v60 = vld [vmem:[#allocation10] sm:$0xff] }
 0x1d1   : > { %1377 = vmatpush.bf16.msra.mxu2 %v1995_v4  ;;  %v1990_v59 = vld [vmem:[#allocation10 + $0x8] sm:$0xff]  ;;  %v1981_v61 = vld [vmem:[#allocation2 + $0x30] sm:$0xff]  ;;  %v1988_v62 = vld [vmem:[#allocation2 + $0x38] sm:$0xff] }
 0x1d2   : > { %1076 = vmatpush.bf16.msra.mxu0 %v1978_v44  ;;  %2078 = vmatpush.bf16.msra.mxu3 %v1978_v44  ;;  %v1982_v20 = vld [vmem:[#allocation2] sm:$0xff]  ;;  %v1983_v1 = vld [vmem:[#allocation2 + $0x18] sm:$0xff]  ;;  %v1984_v15 = vld [vmem:[#allocation2 + $0x10] sm:$0xff] }
 0x1d3   : > { %v1985_v27 = vld [vmem:[#allocation2 + $0x8] sm:$0xff]  ;;  %v1986_v33 = vld [vmem:[#allocation2 + $0x20] sm:$0xff] }
 0x1d4   : > { %1281 = vmatpush.bf16.msra.mxu1 %v2002_v6 }
 0x1d5   : > { %1378 = vmatpush.bf16.msra.mxu2 %v1994_v28 }
 0x1d6   : > { %1077 = vmatpush.bf16.msra.mxu0 %v1977_v45  ;;  %2079 = vmatpush.bf16.msra.mxu3 %v1977_v45 }
 0x1d8   : > { %1282 = vmatpush.bf16.msra.mxu1 %v2001_v30 }
 0x1d9   : > { %1379 = vmatpush.bf16.msra.mxu2 %v1993_v8 }
 0x1da   : > { %1078 = vmatpush.bf16.msra.mxu0 %v1976_v57  ;;  %2080 = vmatpush.bf16.msra.mxu3 %v1976_v57 }
 0x1dc   : > { %1283 = vmatpush.bf16.msra.mxu1 %v2000_v12 }
 0x1dd   : > { %1380 = vmatpush.bf16.msra.mxu2 %v1992_v14 }
 0x1de   : > { %1079 = vmatpush.bf16.msra.mxu0 %v1975_v46  ;;  %2081 = vmatpush.bf16.msra.mxu3 %v1975_v46 }
 0x1e0   : > { %1284 = vmatpush.bf16.msra.mxu1 %v1999_v55 }
 0x1e1   : > { %1381 = vmatpush.bf16.msra.mxu2 %v1991_v18 }
 0x1e2   : > { %1080 = vmatpush.bf16.msra.mxu0 %v1974_v47  ;;  %2082 = vmatpush.bf16.msra.mxu3 %v1974_v47 }
 0x1e4   : > { %1285 = vmatpush.bf16.msra.mxu1 %v1998_v56 }
 0x1e5   : > { %1382 = vmatpush.bf16.msra.mxu2 %v1990_v59 }
 0x1e6   : > { %1081 = vmatpush.bf16.msra.mxu0 %v1973_v48  ;;  %2083 = vmatpush.bf16.msra.mxu3 %v1973_v48  ;;  %v2651_v48 = vld [vmem:[%s2733_s7] ss:$0 sm:$0xff] }
 0x1e8   : > { %1286 = vmatpush.bf16.msra.mxu1 %v1997_v16 }
 0x1e9   : > { %1082 = vmatmul.bf16.vlgmr.msra.gmra.mxu0 %v1764_v49  ;;  %1112 = vmatmul.bf16.vlgmr.msra.gmra.mxu3 %v1788_v50 }
 0x1ea   : > { %2084 = vmatpush.bf16.msrb.mxu3 %v2004_v2  ;;  %1383 = vmatpush.bf16.msra.mxu2 %v1989_v60 }
 0x1eb   : > { %1287 = vmatmul.bf16.vlgmr.msra.gmra.mxu1 %v1981_v61 }
 0x1ee   : > { %2085 = vmatpush.bf16.msrb.mxu3 %v2003_v26 }
 0x1f2   : > { %2086 = vmatpush.bf16.msrb.mxu3 %v2002_v6 }
 0x1f6   : > { %2087 = vmatpush.bf16.msrb.mxu3 %v2001_v30 }
 0x1f9   : > { %1087 = vmatmul.bf16.gmra.mxu0 %v1768_v51  ;;  %1117 = vmatmul.bf16.gmra.mxu3 %v1792_v52 }
 0x1fa   : > { %2088 = vmatpush.bf16.msrb.mxu3 %v2000_v12 }
 0x1fb   : > { %1292 = vmatmul.bf16.gmra.mxu1 %v1982_v20 }
 0x1fe   : > { %2089 = vmatpush.bf16.msrb.mxu3 %v1999_v55 }
 0x202   : > { %2090 = vmatpush.bf16.msrb.mxu3 %v1998_v56 }
 0x206   : > { %2091 = vmatpush.bf16.msrb.mxu3 %v1997_v16 }
 0x209   : > { %1092 = vmatmul.bf16.gmra.mxu0 %v1772_v54  ;;  %1317 = vmatmul.bf16.vlgmr.msrb.gmra.mxu3 %v1987_v53 }
 0x20a   : > { %2092 = vmatpush.bf16.msra.mxu3 %v1996_v24 }
 0x20b   : > { %1297 = vmatmul.bf16.gmra.mxu1 %v1983_v1 }
 0x20e   : > { %2093 = vmatpush.bf16.msra.mxu3 %v1995_v4 }
 0x212   : > { %2094 = vmatpush.bf16.msra.mxu3 %v1994_v28 }
 0x216   : > { %2095 = vmatpush.bf16.msra.mxu3 %v1993_v8 }
 0x219   : > { %1097 = vmatmul.bf16.gmra.mxu0 %v1776_v0  ;;  %1322 = vmatmul.bf16.gmra.mxu3 %v1988_v62 }
 0x21a   : > { %2096 = vmatpush.bf16.msra.mxu3 %v1992_v14 }
 0x21b   : > { %1302 = vmatmul.bf16.gmra.mxu1 %v1984_v15 }
 0x21e   : > { %2097 = vmatpush.bf16.msra.mxu3 %v1991_v18 }
 0x222   : > { %2098 = vmatpush.bf16.msra.mxu3 %v1990_v59 }
 0x226   : > { %2099 = vmatpush.bf16.msra.mxu3 %v1989_v60 }
 0x229   : > { %1102 = vmatmul.bf16.gmra.mxu0 %v1780_v10 }
 0x22b   : > { %1307 = vmatmul.bf16.gmra.mxu1 %v1985_v27 }
 0x239   : > { %1107 = vmatmul.bf16.gmra.mxu0 %v1784_v58 }
 0x23b   : > { %1312 = vmatmul.bf16.gmra.mxu1 %v1986_v33 }
 0x266   : > { %v1083_v22 = vpop.f32.mrf.mxu0 }
 0x268   : > { %v1288_v44 = vpop.f32.mrf.mxu1 }
 0x26c   : > { %v1113_v63 = vpop.f32.mrf.mxu3 }
 0x26e   : > { %v1085_v3 = vpop.f32.mrf.mxu0 }
 0x26f   : > { %v1143_v5 = vpack.c.bf16 %v1085_v3, %v1083_v22 }
 0x270   : > { %v1290_v57 = vpop.f32.mrf.mxu1 }
 0x271   : > { %1384 = vmatmul.bf16.vlgmr.msra.gmra.mxu2 %v1143_v5 }
 0x274   : > { %v1115_v7 = vpop.f32.mrf.mxu3 }
 0x275   : > { %v1149_v9 = vpack.c.bf16 %v1115_v7, %v1113_v63 }
 0x276   : > { %v1088_v11 = vpop.f32.mrf.mxu0 }
 0x277   : > { %1414 = vmatmul.bf16.vlgmr.msra.gmra.mxu3 %v1149_v9 }
 0x278   : > { %v1293_v47 = vpop.f32.mrf.mxu1 }
 0x27c   : > { %v1118_v13 = vpop.f32.mrf.mxu3 }
 0x27e   : > { %v1090_v17 = vpop.f32.mrf.mxu0 }
 0x27f   : > { %v1144_v19 = vpack.c.bf16 %v1090_v17, %v1088_v11 }
 0x280   : > { %v1295_v2 = vpop.f32.mrf.mxu1 }
 0x281   : > { %1389 = vmatmul.bf16.gmra.mxu2 %v1144_v19 }
 0x284   : > { %v1120_v21 = vpop.f32.mrf.mxu3 }
 0x285   : > { %v1150_v23 = vpack.c.bf16 %v1120_v21, %v1118_v13 }
 0x286   : > { %v1093_v25 = vpop.f32.mrf.mxu0 }
 0x287   : > { %1419 = vmatmul.bf16.gmra.mxu3 %v1150_v23 }
 0x288   : > { %v1298_v12 = vpop.f32.mrf.mxu1 }
 0x28c   : > { %v1318_v42 = vpop.f32.mrf.mxu3 }
 0x28e   : > { %v1095_v29 = vpop.f32.mrf.mxu0 }
 0x28f   : > { %v1145_v31 = vpack.c.bf16 %v1095_v29, %v1093_v25 }
 0x290   : > { %v1300_v59 = vpop.f32.mrf.mxu1 }
 0x291   : > { %1394 = vmatmul.bf16.gmra.mxu2 %v1145_v31 }
 0x294   : > { %v1320_v43 = vpop.f32.mrf.mxu3 }
 0x296   : > { %v1098_v32 = vpop.f32.mrf.mxu0 }
 0x298   : > { %v1303_v1 = vpop.f32.mrf.mxu1 }
 0x29c   : > { %v1323_v45 = vpop.f32.mrf.mxu3 }
 0x29e   : > { %v1100_v34 = vpop.f32.mrf.mxu0 }
 0x29f   : > { %v1146_v35 = vpack.c.bf16 %v1100_v34, %v1098_v32 }
 0x2a0   : > { %v1305_v9 = vpop.f32.mrf.mxu1 }
 0x2a1   : > { %1399 = vmatmul.bf16.gmra.mxu2 %v1146_v35 }
 0x2a4   : > { %v1325_v46 = vpop.f32.mrf.mxu3 }
 0x2a6   : > { %v1103_v36 = vpop.f32.mrf.mxu0 }
 0x2a8   : > { %v1308_v21 = vpop.f32.mrf.mxu1 }
 0x2ae   : > { %v1105_v37 = vpop.f32.mrf.mxu0 }
 0x2af   : > { %v1147_v38 = vpack.c.bf16 %v1105_v37, %v1103_v36 }
 0x2b0   : > { %v1310_v31 = vpop.f32.mrf.mxu1 }
 0x2b1   : > { %1404 = vmatmul.bf16.gmra.mxu2 %v1147_v38 }
 0x2b6   : > { %v1108_v39 = vpop.f32.mrf.mxu0 }
 0x2b8   : > { %v1313_v35 = vpop.f32.mrf.mxu1 }
 0x2be   : > { %v1110_v40 = vpop.f32.mrf.mxu0 }
 0x2bf   : > { %v1148_v41 = vpack.c.bf16 %v1110_v40, %v1108_v39 }
 0x2c0   : > { %v1315_v39 = vpop.f32.mrf.mxu1 }
 0x2c1   : > { %1409 = vmatmul.bf16.gmra.mxu2 %v1148_v41 }
 0x2f4   : > { %v1385_v49 = vpop.f32.mrf.mxu2 }
 0x2f5   : > { %v1386_v50 = vadd.f32 %v1385_v49, %v1288_v44 }
 0x2f7   : > { %v1429_v51 = vadd.f32 %v2651_v48, %v1386_v50 }
 0x2f9   : > { %1445 = vst [vmem:[%s2734_s8] sm:$0xff] %v1429_v51 }
 0x2fa   : > { %v1415_v52 = vpop.f32.mrf.mxu3 }
 0x2fb   : > { %v1416_v54 = vadd.f32 %v1415_v52, %v1318_v42 }
 0x2fc   : > { %v1387_v0 = vpop.f32.mrf.mxu2 }
 0x2fd   : > { %v1388_v24 = vadd.f32 %v1387_v0, %v1290_v57  ;;  %v1441_v26 = vadd.f32 %v2651_v48, %v1416_v54 }
 0x2ff   : > { %v1430_v4 = vadd.f32 %v2651_v48, %v1388_v24  ;;  %1457 = vst [vmem:[%s2734_s8 + $0x60] sm:$0xff] %v1441_v26 }
 0x301   : > { %1446 = vst [vmem:[%s2734_s8 + $0x8] sm:$0xff] %v1430_v4 }
 0x302   : > { %v1417_v6 = vpop.f32.mrf.mxu3 }
 0x303   : > { %v1418_v28 = vadd.f32 %v1417_v6, %v1320_v43 }
 0x304   : > { %v1390_v30 = vpop.f32.mrf.mxu2 }
 0x305   : > { %v1391_v8 = vadd.f32 %v1390_v30, %v1293_v47  ;;  %v1442_v10 = vadd.f32 %v2651_v48, %v1418_v28 }
 0x307   : > { %v1431_v14 = vadd.f32 %v2651_v48, %v1391_v8  ;;  %1458 = vst [vmem:[%s2734_s8 + $0x68] sm:$0xff] %v1442_v10 }
 0x309   : > { %1447 = vst [vmem:[%s2734_s8 + $0x10] sm:$0xff] %v1431_v14 }
 0x30a   : > { %v1420_v55 = vpop.f32.mrf.mxu3 }
 0x30b   : > { %v1421_v56 = vadd.f32 %v1420_v55, %v1323_v45 }
 0x30c   : > { %v1392_v58 = vpop.f32.mrf.mxu2 }
 0x30d   : > { %v1393_v16 = vadd.f32 %v1392_v58, %v1295_v2  ;;  %v1443_v18 = vadd.f32 %v2651_v48, %v1421_v56 }
 0x30f   : > { %v1432_v53 = vadd.f32 %v2651_v48, %v1393_v16  ;;  %1459 = vst [vmem:[%s2734_s8 + $0x70] sm:$0xff] %v1443_v18 }
 0x311   : > { %1448 = vst [vmem:[%s2734_s8 + $0x18] sm:$0xff] %v1432_v53 }
 0x312   : > { %v1422_v60 = vpop.f32.mrf.mxu3 }
 0x313   : > { %v1423_v61 = vadd.f32 %v1422_v60, %v1325_v46 }
 0x314   : > { %v1395_v62 = vpop.f32.mrf.mxu2 }
 0x315   : > { %v1396_v20 = vadd.f32 %v1395_v62, %v1298_v12  ;;  %v1444_v22 = vadd.f32 %v2651_v48, %v1423_v61 }
 0x317   : > { %v1433_v63 = vadd.f32 %v2651_v48, %v1396_v20  ;;  %1460 = vst [vmem:[%s2734_s8 + $0x78] sm:$0xff] %v1444_v22 }
 0x319   : > { %1449 = vst [vmem:[%s2734_s8 + $0x20] sm:$0xff] %v1433_v63 }
 0x31c   : > { %v1397_v3 = vpop.f32.mrf.mxu2 }
 0x31d   : > { %v1398_v5 = vadd.f32 %v1397_v3, %v1300_v59 }
 0x31f   : > { %v1434_v7 = vadd.f32 %v2651_v48, %v1398_v5 }
 0x321   : > { %1450 = vst [vmem:[%s2734_s8 + $0x28] sm:$0xff] %v1434_v7 }
 0x324   : > { %v1400_v11 = vpop.f32.mrf.mxu2 }
 0x325   : > { %v1401_v13 = vadd.f32 %v1400_v11, %v1303_v1 }
 0x327   : > { %v1435_v15 = vadd.f32 %v2651_v48, %v1401_v13 }
 0x329   : > { %1451 = vst [vmem:[%s2734_s8 + $0x30] sm:$0xff] %v1435_v15 }
 0x32c   : > { %v1402_v17 = vpop.f32.mrf.mxu2 }
 0x32d   : > { %v1403_v19 = vadd.f32 %v1402_v17, %v1305_v9 }
 0x32f   : > { %v1436_v23 = vadd.f32 %v2651_v48, %v1403_v19 }
 0x331   : > { %1452 = vst [vmem:[%s2734_s8 + $0x38] sm:$0xff] %v1436_v23 }
 0x334   : > { %v1405_v25 = vpop.f32.mrf.mxu2 }
 0x335   : > { %v1406_v27 = vadd.f32 %v1405_v25, %v1308_v21 }
 0x337   : > { %v1437_v29 = vadd.f32 %v2651_v48, %v1406_v27 }
 0x339   : > { %1453 = vst [vmem:[%s2734_s8 + $0x40] sm:$0xff] %v1437_v29 }
 0x33c   : > { %v1407_v32 = vpop.f32.mrf.mxu2 }
 0x33d   : > { %v1408_v33 = vadd.f32 %v1407_v32, %v1310_v31 }
 0x33f   : > { %v1438_v34 = vadd.f32 %v2651_v48, %v1408_v33 }
 0x341   : > { %1454 = vst [vmem:[%s2734_s8 + $0x48] sm:$0xff] %v1438_v34 }
 0x344   : > { %v1410_v36 = vpop.f32.mrf.mxu2 }
 0x345   : > { %v1411_v37 = vadd.f32 %v1410_v36, %v1313_v35 }
 0x347   : > { %v1439_v38 = vadd.f32 %v2651_v48, %v1411_v37 }
 0x349   : > { %1455 = vst [vmem:[%s2734_s8 + $0x50] sm:$0xff] %v1439_v38 }
 0x34c   : > { %v1412_v40 = vpop.f32.mrf.mxu2 }
 0x34d   : > { %v1413_v41 = vadd.f32 %v1412_v40, %v1315_v39 }
 0x34f   : > { %v1440_v42 = vadd.f32 %v2651_v48, %v1413_v41 }
 0x351   : > { %1456 = vst [vmem:[%s2734_s8 + $0x58] sm:$0xff] %v1440_v42 }
 0x352 PF: > { %s22_s29 = sadd.s32 1, %s2407_s29   ;;  %s2738_s27 = smov %s2403_s28 }
 0x353   : > { %p19_p9 = scmp.ge.s32.totalorder %s22_s29, 4   ;;  %s2739_s28 = smov %s2741_s30 }
 0x355   :  { %21 = sbr.rel (!%p19_p9) target bundleno = 5 (0x5), region = 115 }
 0x35a   :  { %1486 = vsyncpa [#allocation4], 1 }
 0x35b   :  { %1488 = vsyncpa [#allocation4 + $0x1], 1 }
 0x35c   :  { %1489 = vsyncpa [#allocation6], 1 }
 0x35d   :  { %1490 = vsyncpa [#allocation9], 1 }
 0x35e   :  { %1491 = vsyncpa [#allocation12], 1 }

</bundles_post_ra>
